<compile_context>
chip_gen: v5e
topology: v5e:2x2
jax: 0.10.0
libtpu: 0.0.40
codegen_flags: <defaults>
</compile_context>

<pallas_src>
import jax
import jax.numpy as jnp
from jax.experimental import pallas as pl
from jax.experimental.pallas import tpu as pltpu

# Small, module-consistent shapes.
B, N, T = 2, 3, 8                  # batch, segments, backbone time steps
H = 768                            # backbone hidden size (folded away at inference)
E1, E2 = 256, 192                  # embedding MLP dims
C1, NUM_CLASSES = 32, 2            # classifier dims
FRAME = 64                         # samples per "frame" for the backbone stand-in
L = T * FRAME                      # raw audio samples per segment
BN = B * N
OUT_PAD = 128                      # lane-dense padded output width


def _gelu(x):
    # tanh-approximate GELU (EUP path); differs from torch.nn.GELU() exact erf at ~1e-3.
    return jax.nn.gelu(x, approximate=True)


def head_kernel(x_ref, w1_ref, b1_ref, w2_ref, b2_ref,
                w3_ref, b3_ref, w4_ref, b4_ref, out_ref):
    # x: (B*N, FRAME) bf16 — raw frames already mean-pooled over time T.
    # embedding: Linear(64->256, backbone folded in) -> GELU -> Linear(256->192) -> GELU.
    h = jnp.dot(x_ref[...], w1_ref[...], preferred_element_type=jnp.float32) + b1_ref[...]
    h = _gelu(h)                                                            # (BN, 256) f32
    h = jnp.dot(h.astype(jnp.bfloat16), w2_ref[...],
                preferred_element_type=jnp.float32) + b2_ref[...]
    h = _gelu(h)                                                            # (BN, 192) f32

    # Mean over the N segments of each batch element via a lane-dense averaging matmul
    # (avoids an in-kernel reshape + sublane-reduction relayout).
    out_row = jax.lax.broadcasted_iota(jnp.int32, (B, BN), 0)               # output batch id
    in_row = jax.lax.broadcasted_iota(jnp.int32, (B, BN), 1)                # flattened b*N+n
    lo = out_row * N
    seg = (in_row >= lo) & (in_row < lo + N)
    avg = jnp.where(seg, jnp.float32(1.0 / N), jnp.float32(0.0))            # (B, BN)
    feat = jnp.dot(avg, h, preferred_element_type=jnp.float32)              # (B, 192)

    # classifier: Linear(192->32) -> GELU -> Linear(32->num_classes, padded to 128 lanes).
    c = jnp.dot(feat, w3_ref[...], preferred_element_type=jnp.float32) + b3_ref[...]
    c = _gelu(c)                                                            # (B, 32)
    out_ref[...] = (jnp.dot(c, w4_ref[...], preferred_element_type=jnp.float32)
                    + b4_ref[...])                                          # (B, 128), unmasked store


def wav_classifier_head(pooled_frames, p):
    vm = pl.BlockSpec(memory_space=pltpu.MemorySpace.VMEM)
    args = (pooled_frames,
            p["w1f"], p["b1"], p["w2"], p["b2"],
            p["w3"], p["b3"], p["w4p"], p["b4p"])
    out = pl.pallas_call(
        head_kernel,
        out_shape=jax.ShapeDtypeStruct((B, OUT_PAD), jnp.float32),
        in_specs=[vm] * len(args),
        out_specs=vm,
    )(*args)
    return out[:, :NUM_CLASSES]


@jax.jit
def wav_classifier_forward(audio, prepared):
    # The mean over time commutes with the (linear) backbone stand-in, so only the
    # time-pooled frames (B*N, 64) are fed to the fused Pallas head kernel.
    frames = audio.reshape(BN, T, FRAME)
    pooled = jnp.mean(frames, axis=1)                     # (B*N, FRAME) f32
    return wav_classifier_head(pooled.astype(jnp.bfloat16), prepared)


def init_params(key):
    ks = jax.random.split(key, 10)

    def linear(kw, kb, fan_in, fan_out):
        bound = 1.0 / jnp.sqrt(fan_in)
        w = jax.random.uniform(kw, (fan_in, fan_out), jnp.float32, -bound, bound)
        b = jax.random.uniform(kb, (1, fan_out), jnp.float32, -bound, bound)
        return w, b

    w1, b1 = linear(ks[0], ks[1], H, E1)              # Linear(768, 256)
    w2, b2 = linear(ks[2], ks[3], E1, E2)             # Linear(256, 192)
    w3, b3 = linear(ks[4], ks[5], E2, C1)             # Linear(192, 32)
    w4, b4 = linear(ks[6], ks[7], C1, NUM_CLASSES)    # Linear(32, num_classes)
    w_fe = jax.random.normal(ks[8], (FRAME, H), jnp.float32) * 0.02   # backbone stand-in
    return {"w1": w1, "b1": b1, "w2": w2, "b2": b2,
            "w3": w3, "b3": b3, "w4": w4, "b4": b4, "w_fe": w_fe}


def prepare_inference_params(params):
    # Constant-fold the linear backbone stand-in into the first head layer (exact algebra),
    # cast the two big matmul weights to bf16, and lane-pad the final layer to 128.
    w1f = jnp.dot(params["w_fe"], params["w1"])       # (FRAME, E1) in f32, then bf16
    pad = OUT_PAD - NUM_CLASSES
    return {
        "w1f": w1f.astype(jnp.bfloat16),
        "b1": params["b1"],
        "w2": params["w2"].astype(jnp.bfloat16),
        "b2": params["b2"],
        "w3": params["w3"],
        "b3": params["b3"],
        "w4p": jnp.pad(params["w4"], ((0, 0), (0, pad))),
        "b4p": jnp.pad(params["b4"], ((0, 0), (0, pad))),
    }


def reference_forward(audio, params):
    # Pure-JAX f32 reference of the module forward (unfused backbone path, same tanh GELU).
    frames = audio.reshape(BN, T, FRAME)
    hidden = jnp.einsum("btf,fh->bth", frames, params["w_fe"])   # backbone stand-in
    pooled = jnp.mean(hidden, axis=1)                            # (B*N, 768)
    h = _gelu(pooled @ params["w1"] + params["b1"])
    h = _gelu(h @ params["w2"] + params["b2"])
    feat = jnp.mean(h.reshape(B, N, E2), axis=1)
    c = _gelu(feat @ params["w3"] + params["b3"])
    return c @ params["w4"] + params["b4"]


if __name__ == "__main__":
    key = jax.random.PRNGKey(0)
    k_audio, k_params = jax.random.split(key)
    params = init_params(k_params)
    prepared = prepare_inference_params(params)
    audio = jax.random.normal(k_audio, (B, N, L), jnp.float32)

    out = wav_classifier_forward(audio, prepared)
    out = jax.block_until_ready(out)
    assert out.shape == (B, NUM_CLASSES)
    assert bool(jnp.all(jnp.isfinite(out)))

    # Loose-tolerance check vs the unfused f32 reference (fold is exact; bf16 weights and
    # fp reassociation account for the small residual).
    ref = reference_forward(audio, params)
    assert bool(jnp.allclose(out, ref, rtol=5e-2, atol=5e-2))
    print("KERNEL_OK")
</pallas_src>

<mosaic_0001>
module attributes {stable_mosaic.version = 11 : i64} {
  func.func @head_kernel(%arg0: memref<6x64xbf16, #tpu.memory_space<vmem>>, %arg1: memref<64x256xbf16, #tpu.memory_space<vmem>>, %arg2: memref<1x256xf32, #tpu.memory_space<vmem>>, %arg3: memref<256x192xbf16, #tpu.memory_space<vmem>>, %arg4: memref<1x192xf32, #tpu.memory_space<vmem>>, %arg5: memref<192x32xf32, #tpu.memory_space<vmem>>, %arg6: memref<1x32xf32, #tpu.memory_space<vmem>>, %arg7: memref<32x128xf32, #tpu.memory_space<vmem>>, %arg8: memref<1x128xf32, #tpu.memory_space<vmem>>, %arg9: memref<2x128xf32, #tpu.memory_space<vmem>>) attributes {dimension_semantics = [], scalar_prefetch = 0 : i64, scratch_operands = 0 : i64, tpu.core_type = #tpu.core_type<tc>} {
    %c0 = arith.constant 0 : index
    %c0_0 = arith.constant 0 : index
    %0 = vector.load %arg0[%c0, %c0_0] : memref<6x64xbf16, #tpu.memory_space<vmem>>, vector<6x64xbf16>
    %c0_1 = arith.constant 0 : index
    %c0_2 = arith.constant 0 : index
    %1 = vector.load %arg1[%c0_1, %c0_2] : memref<64x256xbf16, #tpu.memory_space<vmem>>, vector<64x256xbf16>
    %cst = arith.constant dense<0.000000e+00> : vector<6x256xf32>
    %2 = tpu.matmul %0, %1, %cst {dimension_numbers = #tpu.dot_dimension_numbers<[1], [0], [0], [1], [0, 0, 1, 1], [], []>} : vector<6x64xbf16>, vector<64x256xbf16>, vector<6x256xf32> -> vector<6x256xf32>
    %c0_3 = arith.constant 0 : index
    %c0_4 = arith.constant 0 : index
    %3 = vector.load %arg2[%c0_3, %c0_4] : memref<1x256xf32, #tpu.memory_space<vmem>>, vector<1x256xf32>
    %4 = vector.broadcast %3 : vector<1x256xf32> to vector<6x256xf32>
    %5 = arith.addf %2, %4 : vector<6x256xf32>
    %6 = arith.mulf %5, %5 : vector<6x256xf32>
    %7 = arith.mulf %5, %6 : vector<6x256xf32>
    %cst_5 = arith.constant 4.471500e-02 : f32
    %8 = vector.broadcast %cst_5 : f32 to vector<6x256xf32>
    %9 = arith.mulf %8, %7 : vector<6x256xf32>
    %10 = arith.addf %5, %9 : vector<6x256xf32>
    %cst_6 = arith.constant 0.797884583 : f32
    %11 = vector.broadcast %cst_6 : f32 to vector<6x256xf32>
    %12 = arith.mulf %11, %10 : vector<6x256xf32>
    %13 = math.tanh %12 : vector<6x256xf32>
    %cst_7 = arith.constant 1.000000e+00 : f32
    %14 = vector.broadcast %cst_7 : f32 to vector<6x256xf32>
    %15 = arith.addf %14, %13 : vector<6x256xf32>
    %cst_8 = arith.constant 5.000000e-01 : f32
    %16 = vector.broadcast %cst_8 : f32 to vector<6x256xf32>
    %17 = arith.mulf %16, %15 : vector<6x256xf32>
    %18 = arith.mulf %5, %17 : vector<6x256xf32>
    %19 = arith.truncf %18 : vector<6x256xf32> to vector<6x256xbf16>
    %c0_9 = arith.constant 0 : index
    %c0_10 = arith.constant 0 : index
    %20 = vector.load %arg3[%c0_9, %c0_10] : memref<256x192xbf16, #tpu.memory_space<vmem>>, vector<256x192xbf16>
    %cst_11 = arith.constant dense<0.000000e+00> : vector<6x192xf32>
    %21 = tpu.matmul %19, %20, %cst_11 {dimension_numbers = #tpu.dot_dimension_numbers<[1], [0], [0], [1], [0, 0, 1, 1], [], []>} : vector<6x256xbf16>, vector<256x192xbf16>, vector<6x192xf32> -> vector<6x192xf32>
    %c0_12 = arith.constant 0 : index
    %c0_13 = arith.constant 0 : index
    %22 = vector.load %arg4[%c0_12, %c0_13] : memref<1x192xf32, #tpu.memory_space<vmem>>, vector<1x192xf32>
    %23 = vector.broadcast %22 : vector<1x192xf32> to vector<6x192xf32>
    %24 = arith.addf %21, %23 : vector<6x192xf32>
    %25 = arith.mulf %24, %24 : vector<6x192xf32>
    %26 = arith.mulf %24, %25 : vector<6x192xf32>
    %cst_14 = arith.constant 4.471500e-02 : f32
    %27 = vector.broadcast %cst_14 : f32 to vector<6x192xf32>
    %28 = arith.mulf %27, %26 : vector<6x192xf32>
    %29 = arith.addf %24, %28 : vector<6x192xf32>
    %cst_15 = arith.constant 0.797884583 : f32
    %30 = vector.broadcast %cst_15 : f32 to vector<6x192xf32>
    %31 = arith.mulf %30, %29 : vector<6x192xf32>
    %32 = math.tanh %31 : vector<6x192xf32>
    %cst_16 = arith.constant 1.000000e+00 : f32
    %33 = vector.broadcast %cst_16 : f32 to vector<6x192xf32>
    %34 = arith.addf %33, %32 : vector<6x192xf32>
    %cst_17 = arith.constant 5.000000e-01 : f32
    %35 = vector.broadcast %cst_17 : f32 to vector<6x192xf32>
    %36 = arith.mulf %35, %34 : vector<6x192xf32>
    %37 = arith.mulf %24, %36 : vector<6x192xf32>
    %38 = tpu.iota {dimensions = array<i32: 0>} : vector<2x6xi32>
    %39 = tpu.iota {dimensions = array<i32: 1>} : vector<2x6xi32>
    %c3_i32 = arith.constant 3 : i32
    %40 = vector.broadcast %c3_i32 : i32 to vector<2x6xi32>
    %41 = arith.muli %38, %40 : vector<2x6xi32>
    %42 = arith.cmpi sge, %39, %41 : vector<2x6xi32>
    %c3_i32_18 = arith.constant 3 : i32
    %43 = vector.broadcast %c3_i32_18 : i32 to vector<2x6xi32>
    %44 = arith.addi %41, %43 : vector<2x6xi32>
    %45 = arith.cmpi slt, %39, %44 : vector<2x6xi32>
    %46 = arith.andi %42, %45 : vector<2x6xi1>
    %cst_19 = arith.constant 0.333333343 : f32
    %cst_20 = arith.constant 0.000000e+00 : f32
    %47 = vector.broadcast %cst_19 : f32 to vector<2x6xf32>
    %48 = vector.broadcast %cst_20 : f32 to vector<2x6xf32>
    %49 = arith.select %46, %47, %48 : vector<2x6xi1>, vector<2x6xf32>
    %cst_21 = arith.constant dense<0.000000e+00> : vector<2x192xf32>
    %50 = tpu.matmul %49, %37, %cst_21 {dimension_numbers = #tpu.dot_dimension_numbers<[1], [0], [0], [1], [0, 0, 1, 1], [], []>} : vector<2x6xf32>, vector<6x192xf32>, vector<2x192xf32> -> vector<2x192xf32>
    %c0_22 = arith.constant 0 : index
    %c0_23 = arith.constant 0 : index
    %51 = vector.load %arg5[%c0_22, %c0_23] : memref<192x32xf32, #tpu.memory_space<vmem>>, vector<192x32xf32>
    %cst_24 = arith.constant dense<0.000000e+00> : vector<2x32xf32>
    %52 = tpu.matmul %50, %51, %cst_24 {dimension_numbers = #tpu.dot_dimension_numbers<[1], [0], [0], [1], [0, 0, 1, 1], [], []>} : vector<2x192xf32>, vector<192x32xf32>, vector<2x32xf32> -> vector<2x32xf32>
    %c0_25 = arith.constant 0 : index
    %c0_26 = arith.constant 0 : index
    %53 = vector.load %arg6[%c0_25, %c0_26] : memref<1x32xf32, #tpu.memory_space<vmem>>, vector<1x32xf32>
    %54 = vector.broadcast %53 : vector<1x32xf32> to vector<2x32xf32>
    %55 = arith.addf %52, %54 : vector<2x32xf32>
    %56 = arith.mulf %55, %55 : vector<2x32xf32>
    %57 = arith.mulf %55, %56 : vector<2x32xf32>
    %cst_27 = arith.constant 4.471500e-02 : f32
    %58 = vector.broadcast %cst_27 : f32 to vector<2x32xf32>
    %59 = arith.mulf %58, %57 : vector<2x32xf32>
    %60 = arith.addf %55, %59 : vector<2x32xf32>
    %cst_28 = arith.constant 0.797884583 : f32
    %61 = vector.broadcast %cst_28 : f32 to vector<2x32xf32>
    %62 = arith.mulf %61, %60 : vector<2x32xf32>
    %63 = math.tanh %62 : vector<2x32xf32>
    %cst_29 = arith.constant 1.000000e+00 : f32
    %64 = vector.broadcast %cst_29 : f32 to vector<2x32xf32>
    %65 = arith.addf %64, %63 : vector<2x32xf32>
    %cst_30 = arith.constant 5.000000e-01 : f32
    %66 = vector.broadcast %cst_30 : f32 to vector<2x32xf32>
    %67 = arith.mulf %66, %65 : vector<2x32xf32>
    %68 = arith.mulf %55, %67 : vector<2x32xf32>
    %c0_31 = arith.constant 0 : index
    %c0_32 = arith.constant 0 : index
    %69 = vector.load %arg7[%c0_31, %c0_32] : memref<32x128xf32, #tpu.memory_space<vmem>>, vector<32x128xf32>
    %cst_33 = arith.constant dense<0.000000e+00> : vector<2x128xf32>
    %70 = tpu.matmul %68, %69, %cst_33 {dimension_numbers = #tpu.dot_dimension_numbers<[1], [0], [0], [1], [0, 0, 1, 1], [], []>} : vector<2x32xf32>, vector<32x128xf32>, vector<2x128xf32> -> vector<2x128xf32>
    %c0_34 = arith.constant 0 : index
    %c0_35 = arith.constant 0 : index
    %71 = vector.load %arg8[%c0_34, %c0_35] : memref<1x128xf32, #tpu.memory_space<vmem>>, vector<1x128xf32>
    %72 = vector.broadcast %71 : vector<1x128xf32> to vector<2x128xf32>
    %73 = arith.addf %70, %72 : vector<2x128xf32>
    %c0_36 = arith.constant 0 : index
    %c0_37 = arith.constant 0 : index
    %74 = vector.load %arg9[%c0_36, %c0_37] : memref<2x128xf32, #tpu.memory_space<vmem>>, vector<2x128xf32>
    tpu.vector_store %arg9[%c0_36, %c0_37], %73 {strides = array<i32>} : memref<2x128xf32, #tpu.memory_space<vmem>>, vector<2x128xf32>,
    return
  }
}

</mosaic_0001>

<bundles_post_ra>
// kernel: wav_classifier_forward.1
= control target key start
LH: loop header
LB: loop body
LE: loop exit
PB: predicated region body
PF: predicated region fallthrough
CT: control target
= control target key end

     0   :  { %s1251_s0 = inlined_call_operand.vmem [shape: bf16[6,64], index: 0, kind: input, shape index: {}]   ;;  %s1252_s1 = inlined_call_operand.vmem [shape: bf16[64,256], index: 1, kind: input, shape index: {}]   ;;  %s1253_s2 = inlined_call_operand.vmem [shape: f32[1,256], index: 2, kind: input, shape index: {}]   ;;  %s1254_s3 = inlined_call_operand.vmem [shape: bf16[256,192], index: 3, kind: input, shape index: {}]   ;;  %s1255_s4 = inlined_call_operand.vmem [shape: f32[1,192], index: 4, kind: input, shape index: {}]   ;;  %s1256_s5 = inlined_call_operand.vmem [shape: f32[192,32], index: 5, kind: input, shape index: {}]   ;;  %s1257_s6 = inlined_call_operand.vmem [shape: f32[1,32], index: 6, kind: input, shape index: {}]   ;;  %s1258_s7 = inlined_call_operand.vmem [shape: f32[32,128], index: 7, kind: input, shape index: {}]   ;;  %s1259_s8 = inlined_call_operand.vmem [shape: f32[1,128], index: 8, kind: input, shape index: {}]   ;;  %s1260_s9 = inlined_call_operand.hbm [shape: f32[2,128], index: 9, kind: output, shape index: {}]  }
   0x1   :  { %v623_v0 = vld [vmem:[%s1252_s1 + $0x30] sm:$0xf]  ;;  %v772_v1 = vld [vmem:[%s1252_s1 + $0x34] sm:$0xf0]  ;;  %v771_v2 = vld [vmem:[%s1252_s1 + $0x34] sm:$0xf] }
   0x2   :  { %v624_v3 = vor.u32 %v772_v1, %v623_v0  ;;  %v625_v4 = vld [vmem:[%s1252_s1 + $0x38] sm:$0xf0]  ;;  %v615_v5 = vld [vmem:[%s1252_s1 + $0x20] sm:$0xf]  ;;  %v770_v6 = vld [vmem:[%s1252_s1 + $0x24] sm:$0xf0] }
   0x3   :  { %v628_v7 = vor.u32 %v771_v2, %v625_v4  ;;  %v769_v8 = vld [vmem:[%s1252_s1 + $0x24] sm:$0xf]  ;;  %v617_v9 = vld [vmem:[%s1252_s1 + $0x28] sm:$0xf0]  ;;  %v616_v10 = vor.u32 %v770_v6, %v615_v5  ;;  %v607_v12 = vld [vmem:[%s1252_s1 + $0x10] sm:$0xf] }
   0x4   :  { %97 = vmatpush.bf16.msra.mxu3 %v624_v3  ;;  %v620_v11 = vor.u32 %v769_v8, %v617_v9  ;;  %v768_v13 = vld [vmem:[%s1252_s1 + $0x14] sm:$0xf0]  ;;  %v767_v14 = vld [vmem:[%s1252_s1 + $0x14] sm:$0xf]  ;;  %v609_v15 = vld [vmem:[%s1252_s1 + $0x18] sm:$0xf0] }
   0x5   :  { %110 = vmatpush.bf16.msra.mxu1 %v628_v7  ;;  %v608_v16 = vor.u32 %v768_v13, %v607_v12  ;;  %v599_v17 = vld [vmem:[%s1252_s1] sm:$0xf]  ;;  %v766_v18 = vld [vmem:[%s1252_s1 + $0x4] sm:$0xf0]  ;;  %v612_v19 = vor.u32 %v767_v14, %v609_v15  ;;  %v765_v20 = vld [vmem:[%s1252_s1 + $0x4] sm:$0xf] }
   0x8   :  { %98 = vmatpush.bf16.msra.mxu3 %v616_v10 }
   0x9   :  { %111 = vmatpush.bf16.msra.mxu1 %v620_v11 }
   0xa   :  { %14 = vsyncpa [#allocation3], 0  ;;  %v601_v21 = vld [vmem:[%s1252_s1 + $0x8] sm:$0xf0]  ;;  %v753_v22 = vld [vmem:[%s1254_s3 + $0xf0] sm:$0xf]  ;;  %v600_v26 = vor.u32 %v766_v18, %v599_v17 }
   0xb   :  { %v804_v23 = vld [vmem:[%s1254_s3 + $0xf4] sm:$0xf0]  ;;  %v803_v24 = vld [vmem:[%s1254_s3 + $0xf4] sm:$0xf]  ;;  %v755_v25 = vld [vmem:[%s1254_s3 + $0xf8] sm:$0xf0]  ;;  %v604_v27 = vor.u32 %v765_v20, %v601_v21 }
   0xc   :  { %99 = vmatpush.bf16.msra.mxu3 %v608_v16  ;;  %v754_v28 = vor.u32 %v804_v23, %v753_v22  ;;  %v758_v29 = vor.u32 %v803_v24, %v755_v25  ;;  %v34_v30 = vld [vmem:[%s1251_s0] sm:$0x7]  ;;  %vm89_vm0 = vcmask 523264   ;;  %v802_v32 = vld [vmem:[%s1254_s3 + $0xe4] sm:$0xf0]  ;;  %vm421_vm3 = vcmask 1045504  }
   0xd   :  { %112 = vmatpush.bf16.msra.mxu1 %v612_v19  ;;  %v745_v31 = vld [vmem:[%s1254_s3 + $0xe0] sm:$0xf]  ;;  %v801_v33 = vld [vmem:[%s1254_s3 + $0xe4] sm:$0xf]  ;;  %v747_v35 = vld [vmem:[%s1254_s3 + $0xe8] sm:$0xf0] }
   0xe   :  { %v746_v34 = vor.u32 %v802_v32, %v745_v31  ;;  %v750_v36 = vor.u32 %v801_v33, %v747_v35  ;;  %v689_v37 = vld [vmem:[%s1254_s3 + $0x70] sm:$0xf]  ;;  %v788_v38 = vld [vmem:[%s1254_s3 + $0x74] sm:$0xf0]  ;;  %v787_v39 = vld [vmem:[%s1254_s3 + $0x74] sm:$0xf] }
   0xf   :  { %v690_v40 = vor.u32 %v788_v38, %v689_v37  ;;  %v691_v41 = vld [vmem:[%s1254_s3 + $0x78] sm:$0xf0]  ;;  %v737_v43 = vld [vmem:[%s1254_s3 + $0xd0] sm:$0xf]  ;;  %v800_v44 = vld [vmem:[%s1254_s3 + $0xd4] sm:$0xf0] }
  0x10   :  { %100 = vmatpush.bf16.msra.mxu3 %v600_v26  ;;  %v694_v42 = vor.u32 %v787_v39, %v691_v41  ;;  %v799_v45 = vld [vmem:[%s1254_s3 + $0xd4] sm:$0xf]  ;;  %v738_v46 = vor.u32 %v800_v44, %v737_v43  ;;  %v739_v47 = vld [vmem:[%s1254_s3 + $0xd8] sm:$0xf0]  ;;  %v681_v49 = vld [vmem:[%s1254_s3 + $0x60] sm:$0xf] }
  0x11   :  { %113 = vmatpush.bf16.msra.mxu1 %v604_v27  ;;  %337 = vmatpush.bf16.msra.mxu2 %v690_v40  ;;  %v742_v48 = vor.u32 %v799_v45, %v739_v47  ;;  %v786_v50 = vld [vmem:[%s1254_s3 + $0x64] sm:$0xf0]  ;;  %v785_v51 = vld [vmem:[%s1254_s3 + $0x64] sm:$0xf]  ;;  %v683_v53 = vld [vmem:[%s1254_s3 + $0x68] sm:$0xf0] }
  0x12   :  { %363 = vmatpush.bf16.msra.mxu0 %v694_v42  ;;  %v682_v52 = vor.u32 %v786_v50, %v681_v49  ;;  %v686_v54 = vor.u32 %v785_v51, %v683_v53  ;;  %v729_v55 = vld [vmem:[%s1254_s3 + $0xc0] sm:$0xf]  ;;  %v798_v56 = vld [vmem:[%s1254_s3 + $0xc4] sm:$0xf0]  ;;  %v797_v57 = vld [vmem:[%s1254_s3 + $0xc4] sm:$0xf] }
  0x13   :  { %629 = vmatmul.msk.bf16.vlgmr.msra.gmra.mxu3 %vm89_vm0, %v34_v30  ;;  %v730_v58 = vor.u32 %v798_v56, %v729_v55  ;;  %v731_v59 = vld [vmem:[%s1254_s3 + $0xc8] sm:$0xf0]  ;;  %v673_v61 = vld [vmem:[%s1254_s3 + $0x50] sm:$0xf]  ;;  %v784_v62 = vld [vmem:[%s1254_s3 + $0x54] sm:$0xf0] }
  0x14   :  { %350 = vmatpush.bf16.msrb.mxu3 %v754_v28  ;;  %630 = vmatmul.msk.bf16.vlgmr.msra.gmra.mxu1 %vm89_vm0, %v34_v30  ;;  %v734_v60 = vor.u32 %v797_v57, %v731_v59  ;;  %v783_v63 = vld [vmem:[%s1254_s3 + $0x54] sm:$0xf]  ;;  %v674_v0 = vor.u32 %v784_v62, %v673_v61  ;;  %v675_v1 = vld [vmem:[%s1254_s3 + $0x58] sm:$0xf0]  ;;  %v721_v3 = vld [vmem:[%s1254_s3 + $0xb0] sm:$0xf] }
  0x15   :  { %376 = vmatpush.bf16.msrb.mxu1 %v758_v29  ;;  %338 = vmatpush.bf16.msra.mxu2 %v682_v52  ;;  %v678_v2 = vor.u32 %v783_v63, %v675_v1  ;;  %v796_v4 = vld [vmem:[%s1254_s3 + $0xb4] sm:$0xf0]  ;;  %v795_v5 = vld [vmem:[%s1254_s3 + $0xb4] sm:$0xf]  ;;  %v723_v7 = vld [vmem:[%s1254_s3 + $0xb8] sm:$0xf0] }
  0x16   :  { %364 = vmatpush.bf16.msra.mxu0 %v686_v54  ;;  %v722_v6 = vor.u32 %v796_v4, %v721_v3  ;;  %v726_v8 = vor.u32 %v795_v5, %v723_v7  ;;  %v665_v9 = vld [vmem:[%s1254_s3 + $0x40] sm:$0xf]  ;;  %v782_v10 = vld [vmem:[%s1254_s3 + $0x44] sm:$0xf0]  ;;  %v781_v11 = vld [vmem:[%s1254_s3 + $0x44] sm:$0xf] }
  0x17   :  { %v666_v12 = vor.u32 %v782_v10, %v665_v9  ;;  %v667_v13 = vld [vmem:[%s1254_s3 + $0x48] sm:$0xf0]  ;;  %v713_v14 = vld [vmem:[%s1254_s3 + $0xa0] sm:$0xf]  ;;  %v794_v15 = vld [vmem:[%s1254_s3 + $0xa4] sm:$0xf0] }
  0x18   :  { %351 = vmatpush.bf16.msrb.mxu3 %v746_v34  ;;  %v670_v16 = vor.u32 %v781_v11, %v667_v13  ;;  %v714_v17 = vor.u32 %v794_v15, %v713_v14  ;;  %v793_v18 = vld [vmem:[%s1254_s3 + $0xa4] sm:$0xf]  ;;  %v715_v19 = vld [vmem:[%s1254_s3 + $0xa8] sm:$0xf0]  ;;  %v657_v20 = vld [vmem:[%s1254_s3 + $0x30] sm:$0xf] }
  0x19   :  { %377 = vmatpush.bf16.msrb.mxu1 %v750_v36  ;;  %339 = vmatpush.bf16.msra.mxu2 %v674_v0  ;;  %v718_v21 = vor.u32 %v793_v18, %v715_v19  ;;  %v780_v22 = vld [vmem:[%s1254_s3 + $0x34] sm:$0xf0]  ;;  %v779_v23 = vld [vmem:[%s1254_s3 + $0x34] sm:$0xf]  ;;  %v659_v24 = vld [vmem:[%s1254_s3 + $0x38] sm:$0xf0] }
  0x1a   :  { %365 = vmatpush.bf16.msra.mxu0 %v678_v2  ;;  %v658_v25 = vor.u32 %v780_v22, %v657_v20  ;;  %v662_v26 = vor.u32 %v779_v23, %v659_v24  ;;  %v705_v27 = vld [vmem:[%s1254_s3 + $0x90] sm:$0xf]  ;;  %v792_v28 = vld [vmem:[%s1254_s3 + $0x94] sm:$0xf0]  ;;  %v791_v29 = vld [vmem:[%s1254_s3 + $0x94] sm:$0xf] }
  0x1b   :  { %v706_v30 = vor.u32 %v792_v28, %v705_v27  ;;  %v707_v31 = vld [vmem:[%s1254_s3 + $0x98] sm:$0xf0]  ;;  %v649_v32 = vld [vmem:[%s1254_s3 + $0x20] sm:$0xf]  ;;  %v778_v33 = vld [vmem:[%s1254_s3 + $0x24] sm:$0xf0] }
  0x1c   :  { %352 = vmatpush.bf16.msrb.mxu3 %v738_v46  ;;  %v710_v34 = vor.u32 %v791_v29, %v707_v31  ;;  %v777_v35 = vld [vmem:[%s1254_s3 + $0x24] sm:$0xf]  ;;  %v651_v36 = vld [vmem:[%s1254_s3 + $0x28] sm:$0xf0]  ;;  %v697_v37 = vld [vmem:[%s1254_s3 + $0x80] sm:$0xf]  ;;  %v650_v38 = vor.u32 %v778_v33, %v649_v32 }
  0x1d   :  { %378 = vmatpush.bf16.msrb.mxu1 %v742_v48  ;;  %340 = vmatpush.bf16.msra.mxu2 %v666_v12  ;;  %v790_v39 = vld [vmem:[%s1254_s3 + $0x84] sm:$0xf0]  ;;  %v789_v40 = vld [vmem:[%s1254_s3 + $0x84] sm:$0xf]  ;;  %v699_v41 = vld [vmem:[%s1254_s3 + $0x88] sm:$0xf0]  ;;  %v654_v42 = vor.u32 %v777_v35, %v651_v36  ;;  %v407_v36 = vlaneseq }
  0x1e   :  { %366 = vmatpush.bf16.msra.mxu0 %v670_v16  ;;  %v641_v43 = vld [vmem:[%s1254_s3 + $0x10] sm:$0xf]  ;;  %v776_v44 = vld [vmem:[%s1254_s3 + $0x14] sm:$0xf0]  ;;  %v698_v45 = vor.u32 %v790_v39, %v697_v37  ;;  %v775_v46 = vld [vmem:[%s1254_s3 + $0x14] sm:$0xf]  ;;  %v702_v48 = vor.u32 %v789_v40, %v699_v41 }
  0x1f   :  { %v643_v47 = vld [vmem:[%s1254_s3 + $0x18] sm:$0xf0]  ;;  %v642_v49 = vor.u32 %v776_v44, %v641_v43  ;;  %v43_v51 = vld [vmem:[%s1253_s2] sm:$0x3]  ;;  %v774_v53 = vld [vmem:[%s1254_s3 + $0x4] sm:$0xf0] }
  0x20   :  { %353 = vmatpush.bf16.msrb.mxu3 %v730_v58  ;;  %v646_v50 = vor.u32 %v775_v46, %v643_v47  ;;  %v633_v52 = vld [vmem:[%s1254_s3] sm:$0xf]  ;;  %v773_v54 = vld [vmem:[%s1254_s3 + $0x4] sm:$0xf]  ;;  %v46_v55 = vperm.slane %v43_v51, 1  ;;  %v45_v61 = vperm.slane %v43_v51, 0 }
  0x21   :  { %379 = vmatpush.bf16.msrb.mxu1 %v734_v60  ;;  %341 = vmatpush.bf16.msra.mxu2 %v658_v25  ;;  %v634_v56 = vor.u32 %v774_v53, %v633_v52  ;;  %v635_v57 = vld [vmem:[%s1254_s3 + $0x8] sm:$0xf0]  ;;  %v171_v22 = vld [vmem:[%s1255_s4] sm:$0x3]  ;;  %v483_v31 = vld [vmem:[%s1256_s5 + $0x78] sm:$0xff]  ;;  %vm417_vm5 = vcmask 48128  }
  0x22   :  { %367 = vmatpush.bf16.msra.mxu0 %v662_v26  ;;  %v638_v58 = vor.u32 %v773_v54, %v635_v57  ;;  %v174_v24 = vperm.slane %v171_v22, 1  ;;  %v482_v32 = vld [vmem:[%s1256_s5 + $0x70] sm:$0xff]  ;;  %v491_v37 = vld [vmem:[%s1256_s5 + $0xb8] sm:$0xff]  ;;  %v480_v40 = vld [vmem:[%s1256_s5 + $0x60] sm:$0xff]  ;;  %vm556_vm6 = vcmask 261120   ;;  %s588_s22 = sshll.u32 %s1260_s9, 4  ;;  %s589_s22 = int_to_ptr.hbm [resolvable:$true] %s588_s22 }
  0x23   :  { %v490_v41 = vld [vmem:[%s1256_s5 + $0xb0] sm:$0xff]  ;;  %v489_v43 = vld [vmem:[%s1256_s5 + $0xa8] sm:$0xff]  ;;  %v479_v47 = vld [vmem:[%s1256_s5 + $0x58] sm:$0xff] }
  0x24   :  { %354 = vmatpush.bf16.msrb.mxu3 %v722_v6  ;;  %v478_v52 = vld [vmem:[%s1256_s5 + $0x50] sm:$0xff]  ;;  %v487_v53 = vld [vmem:[%s1256_s5 + $0x98] sm:$0xff] }
  0x25   :  { %380 = vmatpush.bf16.msrb.mxu1 %v726_v8  ;;  %342 = vmatpush.bf16.msra.mxu2 %v650_v38 }
  0x26   :  { %368 = vmatpush.bf16.msra.mxu0 %v654_v42 }
  0x28   :  { %355 = vmatpush.bf16.msrb.mxu3 %v714_v17 }
  0x29   :  { %381 = vmatpush.bf16.msrb.mxu1 %v718_v21  ;;  %343 = vmatpush.bf16.msra.mxu2 %v642_v49  ;;  %v488_v49 = vld [vmem:[%s1256_s5 + $0xa0] sm:$0xff] }
  0x2a   :  { %369 = vmatpush.bf16.msra.mxu0 %v646_v50 }
  0x2c   :  { %356 = vmatpush.bf16.msrb.mxu3 %v706_v30  ;;  %v173_v30 = vperm.slane %v171_v22, 0 }
  0x2d   :  { %382 = vmatpush.bf16.msrb.mxu1 %v710_v34  ;;  %344 = vmatpush.bf16.msra.mxu2 %v634_v56  ;;  %v481_v34 = vld [vmem:[%s1256_s5 + $0x68] sm:$0xff] }
  0x2e   :  { %370 = vmatpush.bf16.msra.mxu0 %v638_v58  ;;  %v477_v56 = vld [vmem:[%s1256_s5 + $0x48] sm:$0xff] }
  0x30   :  { %357 = vmatpush.bf16.msrb.mxu3 %v698_v45 }
  0x31   :  { %383 = vmatpush.bf16.msrb.mxu1 %v702_v48  ;;  %v408_v48 = vshrl.u32 %v407_v36, 7 }
  0x32   :  { %499 = vmatpush.msrb.mxu0 %v483_v31 }
  0x33   :  { %v411_v58 = vmul.u32 3, %v408_v48 }
  0x34   :  { %500 = vmatpush.msrb.mxu0 %v482_v32 }
  0x35   :  { %527 = vmatpush.msra.mxu1 %v491_v37 }
  0x36   :  { %501 = vmatpush.msrb.mxu0 %v481_v34 }
  0x37   :  { %528 = vmatpush.msra.mxu1 %v490_v41 }
  0x38   :  { %502 = vmatpush.msrb.mxu0 %v480_v40 }
  0x39   :  { %529 = vmatpush.msra.mxu1 %v489_v43 }
  0x3a   :  { %503 = vmatpush.msrb.mxu0 %v479_v47 }
  0x3b   :  { %530 = vmatpush.msra.mxu1 %v488_v49 }
  0x3c   :  { %504 = vmatpush.msrb.mxu0 %v478_v52 }
  0x3d   :  { %531 = vmatpush.msra.mxu1 %v487_v53 }
  0x3e   :  { %505 = vmatpush.msrb.mxu0 %v477_v56 }
  0x91   :  { %v115_v59 = vpop.f32.mrf.mxu1 }
  0x92   :  { %v116_v60 = vadd.f32 %v115_v59, %v46_v55  ;;  %v486_v59 = vld [vmem:[%s1256_s5 + $0x90] sm:$0xff] }
  0x93   :  { %532 = vmatpush.msra.mxu1 %v486_v59 }
  0x94   :  { %v120_v62 = vmul.f32 %v116_v60, %v116_v60 }
  0x96   :  { %v122_v63 = vmul.f32 %v120_v62, %v116_v60  ;;  %v102_v0 = vpop.f32.mrf.mxu3 }
  0x97   :  { %v103_v1 = vadd.f32 %v102_v0, %v45_v61  ;;  %v476_v61 = vld [vmem:[%s1256_s5 + $0x40] sm:$0xff]  ;;  %v410_v0 = vand.u32 127, %v407_v36 }
  0x98   :  { %v124_v2 = vmul.f32 0.044715, %v122_v63  ;;  %v475_v63 = vld [vmem:[%s1256_s5 + $0x38] sm:$0xff]  ;;  %506 = vmatpush.msrb.mxu0 %v476_v61 }
  0x99   :  { %v119_v3 = vmul.f32 %v103_v1, %v103_v1  ;;  %v117_v4 = vpop.f32.mrf.mxu1  ;;  %vm412_vm1 = vcmp.ge.s32.totalorder %v410_v0, %v411_v58 }
  0x9a   :  { %v126_v5 = vadd.f32 %v124_v2, %v116_v60  ;;  %507 = vmatpush.msrb.mxu0 %v475_v63 }
  0x9b   :  { %v121_v6 = vmul.f32 %v119_v3, %v103_v1  ;;  %v474_v3 = vld [vmem:[%s1256_s5 + $0x30] sm:$0xff] }
  0x9c   :  { %v128_v7 = vmul.f32 0.7978846, %v126_v5  ;;  %v473_v5 = vld [vmem:[%s1256_s5 + $0x28] sm:$0xff]  ;;  %508 = vmatpush.msrb.mxu0 %v474_v3 }
  0x9d   :  { %v123_v8 = vmul.f32 0.044715, %v121_v6 }
  0x9e   :  { %v104_v9 = vpop.f32.mrf.mxu3  ;;  %809 = vtanh.f32 %v128_v7  ;;  %v472_v7 = vld [vmem:[%s1256_s5 + $0x20] sm:$0xff]  ;;  %509 = vmatpush.msrb.mxu0 %v473_v5 }
  0x9f   :  { %v125_v10 = vadd.f32 %v123_v8, %v103_v1  ;;  %v471_v9 = vld [vmem:[%s1256_s5 + $0x18] sm:$0xff] }
  0xa0   :  { %510 = vmatpush.msrb.mxu0 %v472_v7 }
  0xa1   :  { %v127_v11 = vmul.f32 0.7978846, %v125_v10 }
  0xa2   :  { %511 = vmatpush.msrb.mxu0 %v471_v9 }
  0xa3   :  { %811 = vtanh.f32 %v127_v11 }
  0xa4   :  { %v810_v12 = vpop.eup %809 }
  0xa5   :  { %v132_v13 = vadd.f32 1.0, %v810_v12  ;;  %v470_v12 = vld [vmem:[%s1256_s5 + $0x10] sm:$0xff] }
  0xa6   :  { %512 = vmatpush.msrb.mxu0 %v470_v12 }
  0xa7   :  { %v134_v14 = vmul.f32 0.5, %v132_v13 }
  0xa9   :  { %v812_v15 = vpop.eup %811  ;;  %v136_v16 = vmul.f32 %v134_v14, %v116_v60  ;;  %v845_v14 = vmov 0.0  }
  0xaa   :  { %v131_v17 = vadd.f32 1.0, %v812_v15 }
  0xab   :  { %v138_v18 = vpack.c.bf16 %v136_v16, %v136_v16  ;;  %v469_v16 = vld [vmem:[%s1256_s5 + $0x8] sm:$0xff] }
  0xac   :  { %v133_v19 = vmul.f32 0.5, %v131_v17  ;;  %513 = vmatpush.msrb.mxu0 %v469_v16 }
  0xad   :  { %358 = vmatmul.bf16.vlgmr.msrb.gmra.mxu3 %v138_v18  ;;  %384 = vmatmul.bf16.vlgmr.msrb.gmra.mxu1 %v138_v18 }
  0xae   :  { %v135_v20 = vmul.f32 %v133_v19, %v103_v1  ;;  %v413_v1 = vadd.s32 3, %v411_v58  ;;  %v468_v19 = vld [vmem:[%s1256_s5] sm:$0xff] }
  0xaf   :  { %514 = vmatpush.msrb.mxu0 %v468_v19 }
  0xb0   :  { %v137_v21 = vpack.c.bf16 %v135_v20, %v135_v20  ;;  %vm414_vm2 = vcmp.lt.s32.totalorder %v410_v0, %v413_v1  ;;  %v485_v20 = vld [vmem:[%s1256_s5 + $0x88] sm:$0xff] }
  0xb1   :  { %vm415_vm4 = vmand %vm412_vm1, %vm414_vm2  ;;  %533 = vmatpush.msra.mxu1 %v485_v20 }
  0xb2   :  { %345 = vmatmul.bf16.vlgmr.msra.gmra.mxu2 %v137_v21  ;;  %371 = vmatmul.bf16.vlgmr.msra.gmra.mxu0 %v137_v21  ;;  %v416_v15 = vsel %vm415_vm4, 0.33333334, %v845_v14  ;;  %v484_v21 = vld [vmem:[%s1256_s5 + $0x80] sm:$0xff] }
  0xb3   :  { %534 = vmatpush.msra.mxu1 %v484_v21 }
 0x12a   :  { %v385_v23 = vpop.f32.mrf.mxu1 }
 0x12f   :  { %v372_v25 = vpop.f32.mrf.mxu0 }
 0x130   :  { %v359_v26 = vpop.f32.mrf.mxu3  ;;  %v373_v27 = vadd.f32 %v372_v25, %v174_v24  ;;  %v551_v24 = vld [vmem:[%s1258_s7 + $0x18] sm:$0xff]  ;;  %v550_v25 = vld [vmem:[%s1258_s7 + $0x10] sm:$0xff] }
 0x132   :  { %v1148_v28 = vadd.f32 %v385_v23, %v373_v27  ;;  %v387_v29 = vpop.f32.mrf.mxu1  ;;  %v548_v27 = vld [vmem:[%s1258_s7] sm:$0xff] }
 0x134   :  { %v390_v33 = vmul.f32 %v1148_v28, %v1148_v28 }
 0x135   :  { %v346_v35 = vpop.f32.mrf.mxu2 }
 0x136   :  { %v392_v38 = vmul.f32 %v390_v33, %v1148_v28  ;;  %v347_v39 = vadd.f32 %v346_v35, %v173_v30 }
 0x137   :  { %v374_v42 = vpop.f32.mrf.mxu0 }
 0x138   :  { %v394_v44 = vmul.f32 0.044715, %v392_v38  ;;  %v360_v45 = vadd.f32 %v359_v26, %v347_v39  ;;  %v361_v46 = vpop.f32.mrf.mxu3  ;;  %v549_v26 = vld [vmem:[%s1258_s7 + $0x8] sm:$0xff]  ;;  %v808_v42 = vld [vmem:[%s1259_s8] ss:$0 sm:$0xff] }
 0x13a   :  { %v396_v50 = vadd.f32 %v394_v44, %v1148_v28  ;;  %v389_v51 = vmul.f32 %v360_v45, %v360_v45 }
 0x13c   :  { %v398_v54 = vmul.f32 0.7978846, %v396_v50  ;;  %v391_v55 = vmul.f32 %v389_v51, %v360_v45 }
 0x13d   :  { %v348_v57 = vpop.f32.mrf.mxu2 }
 0x13e   :  { %813 = vtanh.f32 %v398_v54  ;;  %v393_v60 = vmul.f32 0.044715, %v391_v55 }
 0x140   :  { %v395_v62 = vadd.f32 %v393_v60, %v360_v45 }
 0x142   :  { %v397_v2 = vmul.f32 0.7978846, %v395_v62 }
 0x144   :  { %v814_v4 = vpop.eup %813  ;;  %815 = vtanh.f32 %v397_v2 }
 0x145   :  { %v402_v6 = vadd.f32 1.0, %v814_v4 }
 0x147   :  { %v404_v8 = vmul.f32 0.5, %v402_v6 }
 0x149   :  { %v406_v10 = vmul.f32 %v404_v8, %v1148_v28  ;;  %v807_v28 = vld [vmem:[%s1257_s6] ss:$0 sm:$0xff]  ;;  %s846_s6 = smov [#allocation2]  }
 0x14a   :  { %v816_v11 = vpop.eup %815  ;;  %s586_s19 = sshll.u32 %s846_s6, 4  ;;  %s587_s19 = int_to_ptr.vmem [resolvable:$true] %s586_s19 }
 0x14b   :  { %761 = vmatpush.msk.msra.mxu3 %vm421_vm3, %v406_v10  ;;  %v401_v13 = vadd.f32 1.0, %v816_v11 }
 0x14c   :  { %762 = vmatmul.msk.f32.vlgmr.msra.gmra.mxu3 %vm417_vm5, %v416_v15 }
 0x14d   :  { %v403_v17 = vmul.f32 0.5, %v401_v13 }
 0x14f   :  { %v405_v18 = vmul.f32 %v403_v17, %v360_v45 }
 0x151   :  { %759 = vmatpush.msk.msrb.mxu2 %vm421_vm3, %v405_v18 }
 0x152   :  { %760 = vmatmul.msk.f32.vlgmr.msrb.gmra.mxu2 %vm417_vm5, %v416_v15 }
 0x153   :  { %572 = vmatpush.msra.mxu2 %v551_v24 }
 0x155   :  { %573 = vmatpush.msra.mxu2 %v550_v25 }
 0x157   :  { %574 = vmatpush.msra.mxu2 %v549_v26 }
 0x159   :  { %575 = vmatpush.msra.mxu2 %v548_v27 }
 0x1cf   :  { %v465_v22 = vpop.f32.mrf.mxu3 }
 0x1d0   :  { %763 = vmatmul.msk.f32.vlgmr.msra.gmra.mxu1 %vm89_vm0, %v465_v22 }
 0x1d5   :  { %v445_v23 = vpop.f32.mrf.mxu2 }
 0x1d6   :  { %515 = vmatmul.f32.vlgmr.msrb.gmra.mxu0 %v445_v23 }
 0x24d   :  { %v536_v30 = vpop.f32.mrf.mxu1 }
 0x253   :  { %v516_v29 = vpop.f32.mrf.mxu0 }
 0x254   :  { %v517_v31 = vadd.f32 %v807_v28, %v516_v29 }
 0x256   :  { %v537_v32 = vadd.f32 %v536_v30, %v517_v31 }
 0x258   :  { %v539_v33 = vmul.f32 %v537_v32, %v537_v32 }
 0x25a   :  { %v540_v34 = vmul.f32 %v539_v33, %v537_v32 }
 0x25c   :  { %v541_v35 = vmul.f32 0.044715, %v540_v34 }
 0x25e   :  { %v542_v36 = vadd.f32 %v541_v35, %v537_v32 }
 0x260   :  { %v543_v37 = vmul.f32 0.7978846, %v542_v36 }
 0x262   :  { %817 = vtanh.f32 %v543_v37 }
 0x268   :  { %v818_v38 = vpop.eup %817 }
 0x269   :  { %v545_v39 = vadd.f32 1.0, %v818_v38 }
 0x26b   :  { %v546_v40 = vmul.f32 0.5, %v545_v39 }
 0x26d   :  { %v547_v41 = vmul.f32 %v546_v40, %v537_v32 }
 0x26f   :  { %764 = vmatmul.msk.f32.vlgmr.msra.gmra.mxu2 %vm556_vm6, %v547_v41 }
 0x2f2   :  { %v577_v43 = vpop.f32.mrf.mxu2 }
 0x2f3   :  { %v578_v44 = vadd.f32 %v808_v42, %v577_v43 }
 0x2f5   :  { %580 = vst [vmem:[#allocation2] sm:$0x3] %v578_v44 }
 0x2f6   :  { %591 = dma.vmem_to_hbm [thread:$0]  %s587_s19, 32, %s589_s22, [#allocation3]  }
 0x2f7   :  { %843 = dma.done.wait [#allocation3], 32  }
 0x2f8   :  { %844 = vsyncadd [#allocation3], 4294967264 }
 0x2f9   :  { %596 = vsyncpa [#allocation3], 1 }

</bundles_post_ra>
